<compile_context>
chip_gen: v7x
topology: tpu7x:2x2x1
jax: 0.10.0
libtpu: 0.0.40
codegen_flags: <defaults>
</compile_context>

<pallas_src>
import functools

import jax
import jax.numpy as jnp
from jax.experimental import pallas as pl
from jax.experimental.pallas import tpu as pltpu


def _seg_head_kernel(x_ref, w_ref, b_ref, o_ref):
    # x_ref: (TM, F) f32 — natural token-major layout (no wrapper transpose).
    # w_ref: (F, C)  f32 — resident (constant index map -> DMA'd once).
    # b_ref: (C,)    f32 — SMEM scalars (a (1,C) VMEM block would pad to (8,128)).
    # o_ref: (C, TM) f32 — lane-dense output block (tokens on the lane axis).
    C = o_ref.shape[0]
    xT = x_ref[...].T                        # (F, TM): XLU transpose; hidden under HBM DMA.
    if C == 1:
        # VPU broadcast-multiply + sublane reduce (F=32 -> 4 vregs per lane column);
        # the MXU would be degenerate at num_classes == 1.
        logits = jnp.sum(xT * w_ref[...], axis=0, keepdims=True) + b_ref[0]    # (1, TM)
    else:
        # One MXU pass produces every class at once (per review, for larger C).
        acc = jnp.dot(w_ref[...].T, xT, preferred_element_type=jnp.float32)    # (C, TM)
        logits = jnp.concatenate(
            [acc[c:c + 1, :] + b_ref[c] for c in range(C)], axis=0)
    # sigmoid runs on the EUP; single full-width lane-dense store.
    o_ref[...] = jax.nn.sigmoid(logits).astype(o_ref.dtype)


def _round_up_128(n: int) -> int:
    return ((n + 127) // 128) * 128


@functools.partial(jax.jit, static_argnames=("tile_m",))
def linear_segmentation_head(x, weight, bias, *, tile_m=8192):
    """Pallas TPU implementation of LinearSegmentationHead.forward.

    x:      (..., in_features); prod(leading dims) * num_classes must be divisible by 576
    weight: (in_features, num_classes)   (transposed nn.Linear weight)
    bias:   (num_classes,)
    returns float32 probabilities of shape (-1, 24, 24), matching the PyTorch module.
    """
    F = x.shape[-1]
    C = weight.shape[1]
    x2d = x.reshape(-1, F)                   # free reshape; tokens stay row-major
    M = x2d.shape[0]
    if (M * C) % 576 != 0:
        raise ValueError(
            f"reshape(-1, 24, 24) needs num_tokens*num_classes % 576 == 0; "
            f"got {M} tokens x {C} classes")

    # Tile selection. VMEM cost per input buffer is tm * 512 B (minor dim padded to
    # 128 lanes), so tm=8192 -> 4 MiB/buffer, ~11 MiB total across buffers/temps.
    t_req = max(128, _round_up_128(tile_m))
    if M <= t_req:
        if M > 8192:
            tm = _round_up_128(pl.cdiv(M, 2))   # >=2 grid steps so v7x's 2nd TC has work
        else:
            tm = M                              # single block == full array dims
    else:
        tm = t_req
    n_blocks = pl.cdiv(M, tm)
    m_out = n_blocks * tm                       # output blocks are never ragged

    out = pl.pallas_call(
        _seg_head_kernel,
        out_shape=jax.ShapeDtypeStruct((C, m_out), jnp.float32),
        grid_spec=pltpu.PrefetchScalarGridSpec(
            num_scalar_prefetch=0,
            grid=(n_blocks,),
            in_specs=[
                # Natural layout; last block may be ragged (undefined tail rows are
                # computed into output columns >= M and sliced off below).
                pl.BlockSpec((tm, F), lambda i: (i, 0)),
                pl.BlockSpec((F, C), lambda i: (0, 0)),             # resident weight
                pl.BlockSpec(memory_space=pltpu.MemorySpace.SMEM),  # bias scalars
            ],
            out_specs=pl.BlockSpec((C, tm), lambda i: (0, i)),      # lane-dense output
        ),
        compiler_params=pltpu.CompilerParams(
            dimension_semantics=("parallel",),      # lets v7x's 2 TCs split large M
            vmem_limit_bytes=32 * 1024 * 1024,      # headroom (also for larger tile_m)
        ),
    )(x2d, weight, bias)

    out = out[:, :M]                         # drop the ragged tail columns (if any)
    if C == 1:
        return out.reshape(-1, 24, 24)       # (1, M) is already token-major
    # (C, M) -> (M, C) matches PyTorch's trailing class dim, then reshape(-1, 24, 24).
    return out.T.reshape(-1, 24, 24)


if __name__ == "__main__":
    # Per-image 24x24 patch grid -> 576 tokens; small hidden dim; 1 class.
    N = 24 * 24
    in_features = 32
    num_classes = 1

    key = jax.random.PRNGKey(0)
    kx, kw, kb, kbig = jax.random.split(key, 4)

    bound = 1.0 / (in_features ** 0.5)       # deterministic nn.Linear-style init
    weight = jax.random.uniform(kw, (in_features, num_classes),
                                minval=-bound, maxval=bound, dtype=jnp.float32)
    bias = jax.random.uniform(kb, (num_classes,),
                              minval=-bound, maxval=bound, dtype=jnp.float32)

    def reference(xa):
        logits = xa.reshape(-1, in_features) @ weight + bias
        return jax.nn.sigmoid(logits).reshape(-1, 24, 24)

    # B=2 -> M=1152: single exact block, one Pallas dispatch, no padding anywhere.
    x2 = jax.random.normal(kx, (2, N, in_features), dtype=jnp.float32)
    p2 = jax.block_until_ready(linear_segmentation_head(x2, weight, bias))
    assert p2.shape == (2, 24, 24)
    assert jnp.allclose(p2, reference(x2), atol=1e-5, rtol=1e-5)

    # B=1 -> M=576 (not a multiple of 128): full-array block, still no padding.
    x1 = x2[:1]
    p1 = jax.block_until_ready(linear_segmentation_head(x1, weight, bias))
    assert p1.shape == (1, 24, 24)
    assert jnp.allclose(p1, reference(x1), atol=1e-5, rtol=1e-5)

    # B=40 -> M=23040: multi-step grid (tm=8192 -> 3 steps) with a ragged last
    # input block (6656 valid rows); exercises the no-pad tail path.
    x40 = jax.random.normal(kbig, (40, N, in_features), dtype=jnp.float32)
    p40 = jax.block_until_ready(linear_segmentation_head(x40, weight, bias))
    assert p40.shape == (40, 24, 24)
    assert jnp.allclose(p40, reference(x40), atol=1e-5, rtol=1e-5)

    # TODO(synk): the static `interpolate` (bilinear resize) helper is not part of
    # forward(); use jax.image.resize outside the kernel if needed.
    print("KERNEL_OK")
</pallas_src>

<mosaic_0001>
module attributes {stable_mosaic.version = 11 : i64} {
  func.func @_seg_head_kernel(%arg0: i32, %arg1: memref<1152x32xf32, #tpu.memory_space<vmem>>, %arg2: memref<32x1xf32, #tpu.memory_space<vmem>>, %arg3: memref<1xf32, #tpu.memory_space<smem>>, %arg4: memref<1x1152xf32, #tpu.memory_space<vmem>>) attributes {dimension_semantics = [#tpu.dimension_semantics<parallel>], iteration_bounds = array<i64: 1>, scalar_prefetch = 0 : i64, scratch_operands = 0 : i64, tpu.core_type = #tpu.core_type<tc>, window_params = [{transform_indices = @transform_0, window_bounds = array<i64: 1152, 32>}, {pipeline_mode = #tpu.pipeline_mode<synchronous>, transform_indices = @transform_1, window_bounds = array<i64: 32, 1>}, {transform_indices = @transform_2, window_bounds = array<i64: 1>}, {transform_indices = @transform_3, window_bounds = array<i64: 1, 1152>}]} {
    %c0 = arith.constant 0 : index
    %c0_0 = arith.constant 0 : index
    %0 = vector.load %arg1[%c0, %c0_0] : memref<1152x32xf32, #tpu.memory_space<vmem>>, vector<1152x32xf32>
    %1 = tpu.transpose %0, [1, 0] : vector<1152x32xf32> -> vector<32x1152xf32>
    %c0_1 = arith.constant 0 : index
    %c0_2 = arith.constant 0 : index
    %2 = vector.load %arg2[%c0_1, %c0_2] : memref<32x1xf32, #tpu.memory_space<vmem>>, vector<32x1xf32>
    %3 = vector.broadcast %2 : vector<32x1xf32> to vector<32x1152xf32>
    %4 = arith.mulf %1, %3 : vector<32x1152xf32>
    %cst = arith.constant dense<0.000000e+00> : vector<1152xf32>
    %5 = vector.multi_reduction <add>, %4, %cst [0] : vector<32x1152xf32> to vector<1152xf32>
    %6 = vector.shape_cast %5 : vector<1152xf32> to vector<1x1152xf32>
    %c0_3 = arith.constant 0 : index
    %7 = memref.load %arg3[%c0_3] : memref<1xf32, #tpu.memory_space<smem>>
    %8 = vector.broadcast %7 : f32 to vector<1x1152xf32>
    %9 = arith.addf %6, %8 : vector<1x1152xf32>
    %10 = arith.negf %9 : vector<1x1152xf32>
    %11 = math.exp %10 : vector<1x1152xf32>
    %cst_4 = arith.constant 1.000000e+00 : f32
    %12 = vector.broadcast %cst_4 : f32 to vector<1x1152xf32>
    %13 = arith.addf %12, %11 : vector<1x1152xf32>
    %14 = arith.divf %12, %13 : vector<1x1152xf32>
    %c0_5 = arith.constant 0 : index
    %c0_6 = arith.constant 0 : index
    %15 = vector.load %arg4[%c0_5, %c0_6] : memref<1x1152xf32, #tpu.memory_space<vmem>>, vector<1x1152xf32>
    tpu.vector_store %arg4[%c0_5, %c0_6], %14 {strides = array<i32>} : memref<1x1152xf32, #tpu.memory_space<vmem>>, vector<1x1152xf32>,
    return
  }
  func.func @transform_0(%arg0: i32) -> (i32, i32) {
    %c0_i32 = arith.constant 0 : i32
    %c0_i32_0 = arith.constant 0 : i32
    return %arg0, %c0_i32 : i32, i32
  }
  func.func @transform_1(%arg0: i32) -> (i32, i32) {
    %c0_i32 = arith.constant 0 : i32
    %c0_i32_0 = arith.constant 0 : i32
    %c0_i32_1 = arith.constant 0 : i32
    return %c0_i32, %c0_i32_0 : i32, i32
  }
  func.func @transform_2(%arg0: i32) -> i32 {
    %c0_i32 = arith.constant 0 : i32
    %c0_i32_0 = arith.constant 0 : i32
    return %c0_i32 : i32
  }
  func.func @transform_3(%arg0: i32) -> (i32, i32) {
    %c0_i32 = arith.constant 0 : i32
    %c0_i32_0 = arith.constant 0 : i32
    return %c0_i32, %arg0 : i32, i32
  }
}

</mosaic_0001>

<bundles_post_ra>
// kernel: linear_segmentation_head.1
= control target key start
LH: loop header
LB: loop body
LE: loop exit
PB: predicated region body
PF: predicated region fallthrough
CT: control target
= control target key end

     0   :  { %v786_v0 = vmov 0   ;;  %s1321_s1 = inlined_call_operand.vmem [shape: f32[32,1], index: 1, kind: input, shape index: {}]   ;;  %s1322_s0 = inlined_call_operand.vmem [shape: f32[1152,32], index: 0, kind: input, shape index: {}]   ;;  %s1323_s2 = inlined_call_operand.<no memory space> [shape: f32[1], index: 2, kind: input, shape index: {}]   ;;  %s1324_s3 = inlined_call_operand.vmem [shape: f32[1,1152], index: 3, kind: output, shape index: {}]  }
   0x1   :  { %748 = vset.pattern.permute.xlu1 %v786_v0  ;;  %v447_v1 = vld [vmem:[%s1321_s1] sm:$0xff]  ;;  %v448_v3 = vld [vmem:[%s1321_s1 + $0x8] sm:$0xff]  ;;  %v449_v5 = vld [vmem:[%s1321_s1 + $0x10] sm:$0xff] }
   0x2   :  { %v15_v2 = vld [vmem:[%s1322_s0] sm:$0xff]  ;;  %453 = vperm.xlu1 %748, %v447_v1   ;;  %v16_v4 = vld [vmem:[%s1322_s0 + $0x8] sm:$0xff]  ;;  %v17_v6 = vld [vmem:[%s1322_s0 + $0x10] sm:$0xff] }
   0x3   :  { %159 = vxpose.xlu0.b32.start [1/16] (narrow) %v15_v2, 32  ;;  %v450_v7 = vld [vmem:[%s1321_s1 + $0x18] sm:$0xff]  ;;  %v19_v9 = vld [vmem:[%s1322_s0 + $0x20] sm:$0xff]  ;;  %v20_v10 = vld [vmem:[%s1322_s0 + $0x28] sm:$0xff] }
   0x4   :  { %v18_v8 = vld [vmem:[%s1322_s0 + $0x18] sm:$0xff]  ;;  %v21_v11 = vld [vmem:[%s1322_s0 + $0x30] sm:$0xff]  ;;  %v23_v13 = vld [vmem:[%s1322_s0 + $0x40] sm:$0xff] }
   0x5   :  { %v22_v12 = vld [vmem:[%s1322_s0 + $0x38] sm:$0xff]  ;;  %v24_v14 = vld [vmem:[%s1322_s0 + $0x48] sm:$0xff]  ;;  %v25_v15 = vld [vmem:[%s1322_s0 + $0x50] sm:$0xff] }
   0x6   :  { %458 = vperm.xlu1 %748, %v448_v3   ;;  %v26_v16 = vld [vmem:[%s1322_s0 + $0x58] sm:$0xff]  ;;  %v27_v17 = vld [vmem:[%s1322_s0 + $0x60] sm:$0xff]  ;;  %v28_v18 = vld [vmem:[%s1322_s0 + $0x68] sm:$0xff] }
   0x7   :  { %160 = vxpose.xlu0.b32.cont [2/16] (narrow) %v16_v4, 32  ;;  %v31_v19 = vld [vmem:[%s1322_s0 + $0x80] sm:$0xff]  ;;  %v29_v20 = vld [vmem:[%s1322_s0 + $0x70] sm:$0xff]  ;;  %v32_v21 = vld [vmem:[%s1322_s0 + $0x88] sm:$0xff] }
   0x8   :  { %v30_v22 = vld [vmem:[%s1322_s0 + $0x78] sm:$0xff]  ;;  %v33_v23 = vld [vmem:[%s1322_s0 + $0x90] sm:$0xff]  ;;  %v47_v24 = vld [vmem:[%s1322_s0 + $0x100] sm:$0xff] }
   0x9   :  { %v34_v25 = vld [vmem:[%s1322_s0 + $0x98] sm:$0xff]  ;;  %v48_v26 = vld [vmem:[%s1322_s0 + $0x108] sm:$0xff]  ;;  %v35_v27 = vld [vmem:[%s1322_s0 + $0xa0] sm:$0xff] }
   0xa   :  { %463 = vperm.xlu1 %748, %v449_v5   ;;  %v49_v28 = vld [vmem:[%s1322_s0 + $0x110] sm:$0xff]  ;;  %v36_v29 = vld [vmem:[%s1322_s0 + $0xa8] sm:$0xff]  ;;  %v50_v30 = vld [vmem:[%s1322_s0 + $0x118] sm:$0xff] }
   0xb   :  { %161 = vxpose.xlu0.b32.cont [3/16] (narrow) %v17_v6, 32  ;;  %v37_v31 = vld [vmem:[%s1322_s0 + $0xb0] sm:$0xff]  ;;  %v51_v32 = vld [vmem:[%s1322_s0 + $0x120] sm:$0xff]  ;;  %v38_v33 = vld [vmem:[%s1322_s0 + $0xb8] sm:$0xff] }
   0xc   :  { %v52_v34 = vld [vmem:[%s1322_s0 + $0x128] sm:$0xff]  ;;  %v39_v35 = vld [vmem:[%s1322_s0 + $0xc0] sm:$0xff]  ;;  %v53_v36 = vld [vmem:[%s1322_s0 + $0x130] sm:$0xff] }
   0xd   :  { %v40_v37 = vld [vmem:[%s1322_s0 + $0xc8] sm:$0xff]  ;;  %v54_v38 = vld [vmem:[%s1322_s0 + $0x138] sm:$0xff]  ;;  %v41_v39 = vld [vmem:[%s1322_s0 + $0xd0] sm:$0xff] }
   0xe   :  { %468 = vperm.xlu1 %748, %v450_v7   ;;  %v55_v40 = vld [vmem:[%s1322_s0 + $0x140] sm:$0xff]  ;;  %v42_v41 = vld [vmem:[%s1322_s0 + $0xd8] sm:$0xff]  ;;  %v56_v42 = vld [vmem:[%s1322_s0 + $0x148] sm:$0xff] }
   0xf   :  { %162 = vxpose.xlu0.b32.cont [4/16] (narrow) %v18_v8, 32  ;;  %v43_v43 = vld [vmem:[%s1322_s0 + $0xe0] sm:$0xff]  ;;  %v57_v44 = vld [vmem:[%s1322_s0 + $0x150] sm:$0xff]  ;;  %v44_v45 = vld [vmem:[%s1322_s0 + $0xe8] sm:$0xff] }
  0x10   :  { %v58_v46 = vld [vmem:[%s1322_s0 + $0x158] sm:$0xff]  ;;  %v45_v47 = vld [vmem:[%s1322_s0 + $0xf0] sm:$0xff]  ;;  %v59_v48 = vld [vmem:[%s1322_s0 + $0x160] sm:$0xff] }
  0x11   :  { %v46_v49 = vld [vmem:[%s1322_s0 + $0xf8] sm:$0xff]  ;;  %v60_v50 = vld [vmem:[%s1322_s0 + $0x168] sm:$0xff]  ;;  %v63_v51 = vld [vmem:[%s1322_s0 + $0x180] sm:$0xff] }
  0x12   :  { %v61_v52 = vld [vmem:[%s1322_s0 + $0x170] sm:$0xff]  ;;  %v64_v53 = vld [vmem:[%s1322_s0 + $0x188] sm:$0xff]  ;;  %v62_v54 = vld [vmem:[%s1322_s0 + $0x178] sm:$0xff] }
  0x13   :  { %163 = vxpose.xlu0.b32.cont [5/16] (narrow) %v19_v9, 32  ;;  %v65_v55 = vld [vmem:[%s1322_s0 + $0x190] sm:$0xff]  ;;  %v79_v56 = vld [vmem:[%s1322_s0 + $0x200] sm:$0xff]  ;;  %v66_v57 = vld [vmem:[%s1322_s0 + $0x198] sm:$0xff] }
  0x14   :  { %v80_v58 = vld [vmem:[%s1322_s0 + $0x208] sm:$0xff]  ;;  %v67_v59 = vld [vmem:[%s1322_s0 + $0x1a0] sm:$0xff]  ;;  %v81_v60 = vld [vmem:[%s1322_s0 + $0x210] sm:$0xff] }
  0x15   :  { %v68_v61 = vld [vmem:[%s1322_s0 + $0x1a8] sm:$0xff]  ;;  %v82_v62 = vld [vmem:[%s1322_s0 + $0x218] sm:$0xff]  ;;  %v69_v63 = vld [vmem:[%s1322_s0 + $0x1b0] sm:$0xff] }
  0x16   :  { %v83_v1 = vld [vmem:[%s1322_s0 + $0x220] sm:$0xff]  ;;  %v70_v2 = vld [vmem:[%s1322_s0 + $0x1b8] sm:$0xff]  ;;  %v84_v3 = vld [vmem:[%s1322_s0 + $0x228] sm:$0xff] }
  0x17   :  { %164 = vxpose.xlu0.b32.cont [6/16] (narrow) %v20_v10, 32  ;;  %v71_v4 = vld [vmem:[%s1322_s0 + $0x1c0] sm:$0xff]  ;;  %v85_v5 = vld [vmem:[%s1322_s0 + $0x230] sm:$0xff]  ;;  %v72_v6 = vld [vmem:[%s1322_s0 + $0x1c8] sm:$0xff] }
  0x18   :  { %v86_v7 = vld [vmem:[%s1322_s0 + $0x238] sm:$0xff]  ;;  %v73_v8 = vld [vmem:[%s1322_s0 + $0x1d0] sm:$0xff]  ;;  %v87_v9 = vld [vmem:[%s1322_s0 + $0x240] sm:$0xff] }
  0x19   :  { %v74_v10 = vld [vmem:[%s1322_s0 + $0x1d8] sm:$0xff] }
  0x1b   :  { %165 = vxpose.xlu0.b32.cont [7/16] (narrow) %v21_v11, 32  ;;  %v88_v11 = vld [vmem:[%s1322_s0 + $0x248] sm:$0xff] }
  0x1f   :  { %166 = vxpose.xlu0.b32.cont [8/16] (narrow) %v22_v12, 32  ;;  %v75_v12 = vld [vmem:[%s1322_s0 + $0x1e0] sm:$0xff] }
  0x23   :  { %167 = vxpose.xlu0.b32.cont [9/16] (narrow) %v23_v13, 32  ;;  %v89_v13 = vld [vmem:[%s1322_s0 + $0x250] sm:$0xff] }
  0x27   :  { %168 = vxpose.xlu0.b32.cont [10/16] (narrow) %v24_v14, 32  ;;  %v76_v14 = vld [vmem:[%s1322_s0 + $0x1e8] sm:$0xff] }
  0x2b   :  { %169 = vxpose.xlu0.b32.cont [11/16] (narrow) %v25_v15, 32  ;;  %v90_v15 = vld [vmem:[%s1322_s0 + $0x258] sm:$0xff] }
  0x2f   :  { %170 = vxpose.xlu0.b32.cont [12/16] (narrow) %v26_v16, 32  ;;  %v77_v16 = vld [vmem:[%s1322_s0 + $0x1f0] sm:$0xff] }
  0x33   :  { %171 = vxpose.xlu0.b32.cont [13/16] (narrow) %v27_v17, 32  ;;  %v91_v17 = vld [vmem:[%s1322_s0 + $0x260] sm:$0xff] }
  0x37   :  { %172 = vxpose.xlu0.b32.cont [14/16] (narrow) %v28_v18, 32  ;;  %191 = vxpose.xlu1.b32.start [1/16] (narrow) %v31_v19, 32  ;;  %v78_v18 = vld [vmem:[%s1322_s0 + $0x1f8] sm:$0xff]  ;;  %v92_v19 = vld [vmem:[%s1322_s0 + $0x268] sm:$0xff] }
  0x3b   :  { %173 = vxpose.xlu0.b32.cont [15/16] (narrow) %v29_v20, 32  ;;  %192 = vxpose.xlu1.b32.cont [2/16] (narrow) %v32_v21, 32  ;;  %v95_v20 = vld [vmem:[%s1322_s0 + $0x280] sm:$0xff]  ;;  %v93_v21 = vld [vmem:[%s1322_s0 + $0x270] sm:$0xff] }
  0x3f   :  { %174 = vxpose.xlu0.b32.end [16/16] (narrow) %v30_v22, 32  ;;  %193 = vxpose.xlu1.b32.cont [3/16] (narrow) %v33_v23, 32  ;;  %v96_v22 = vld [vmem:[%s1322_s0 + $0x288] sm:$0xff]  ;;  %v94_v23 = vld [vmem:[%s1322_s0 + $0x278] sm:$0xff] }
  0x43   :  { %223 = vxpose.xlu0.b32.start [1/16] (narrow) %v47_v24, 32  ;;  %194 = vxpose.xlu1.b32.cont [4/16] (narrow) %v34_v25, 32  ;;  %v97_v24 = vld [vmem:[%s1322_s0 + $0x290] sm:$0xff]  ;;  %v111_v25 = vld [vmem:[%s1322_s0 + $0x300] sm:$0xff] }
  0x47   :  { %224 = vxpose.xlu0.b32.cont [2/16] (narrow) %v48_v26, 32  ;;  %195 = vxpose.xlu1.b32.cont [5/16] (narrow) %v35_v27, 32  ;;  %v98_v26 = vld [vmem:[%s1322_s0 + $0x298] sm:$0xff]  ;;  %v112_v27 = vld [vmem:[%s1322_s0 + $0x308] sm:$0xff] }
  0x4b   :  { %225 = vxpose.xlu0.b32.cont [3/16] (narrow) %v49_v28, 32  ;;  %196 = vxpose.xlu1.b32.cont [6/16] (narrow) %v36_v29, 32  ;;  %v99_v28 = vld [vmem:[%s1322_s0 + $0x2a0] sm:$0xff]  ;;  %v113_v29 = vld [vmem:[%s1322_s0 + $0x310] sm:$0xff] }
  0x4f   :  { %226 = vxpose.xlu0.b32.cont [4/16] (narrow) %v50_v30, 32  ;;  %197 = vxpose.xlu1.b32.cont [7/16] (narrow) %v37_v31, 32  ;;  %v100_v30 = vld [vmem:[%s1322_s0 + $0x2a8] sm:$0xff]  ;;  %v114_v31 = vld [vmem:[%s1322_s0 + $0x318] sm:$0xff] }
  0x53   :  { %227 = vxpose.xlu0.b32.cont [5/16] (narrow) %v51_v32, 32  ;;  %198 = vxpose.xlu1.b32.cont [8/16] (narrow) %v38_v33, 32  ;;  %v101_v32 = vld [vmem:[%s1322_s0 + $0x2b0] sm:$0xff]  ;;  %v115_v33 = vld [vmem:[%s1322_s0 + $0x320] sm:$0xff] }
  0x57   :  { %228 = vxpose.xlu0.b32.cont [6/16] (narrow) %v52_v34, 32  ;;  %199 = vxpose.xlu1.b32.cont [9/16] (narrow) %v39_v35, 32  ;;  %v102_v34 = vld [vmem:[%s1322_s0 + $0x2b8] sm:$0xff]  ;;  %v116_v35 = vld [vmem:[%s1322_s0 + $0x328] sm:$0xff] }
  0x5b   :  { %229 = vxpose.xlu0.b32.cont [7/16] (narrow) %v53_v36, 32  ;;  %200 = vxpose.xlu1.b32.cont [10/16] (narrow) %v40_v37, 32  ;;  %v103_v36 = vld [vmem:[%s1322_s0 + $0x2c0] sm:$0xff]  ;;  %v117_v37 = vld [vmem:[%s1322_s0 + $0x330] sm:$0xff] }
  0x5f   :  { %230 = vxpose.xlu0.b32.cont [8/16] (narrow) %v54_v38, 32  ;;  %201 = vxpose.xlu1.b32.cont [11/16] (narrow) %v41_v39, 32  ;;  %v104_v38 = vld [vmem:[%s1322_s0 + $0x2c8] sm:$0xff]  ;;  %v118_v39 = vld [vmem:[%s1322_s0 + $0x338] sm:$0xff] }
  0x63   :  { %231 = vxpose.xlu0.b32.cont [9/16] (narrow) %v55_v40, 32  ;;  %202 = vxpose.xlu1.b32.cont [12/16] (narrow) %v42_v41, 32  ;;  %v105_v40 = vld [vmem:[%s1322_s0 + $0x2d0] sm:$0xff]  ;;  %v119_v41 = vld [vmem:[%s1322_s0 + $0x340] sm:$0xff] }
  0x67   :  { %232 = vxpose.xlu0.b32.cont [10/16] (narrow) %v56_v42, 32  ;;  %203 = vxpose.xlu1.b32.cont [13/16] (narrow) %v43_v43, 32  ;;  %v106_v42 = vld [vmem:[%s1322_s0 + $0x2d8] sm:$0xff]  ;;  %v120_v43 = vld [vmem:[%s1322_s0 + $0x348] sm:$0xff] }
  0x6b   :  { %233 = vxpose.xlu0.b32.cont [11/16] (narrow) %v57_v44, 32  ;;  %204 = vxpose.xlu1.b32.cont [14/16] (narrow) %v44_v45, 32  ;;  %v107_v44 = vld [vmem:[%s1322_s0 + $0x2e0] sm:$0xff]  ;;  %v121_v45 = vld [vmem:[%s1322_s0 + $0x350] sm:$0xff] }
  0x6f   :  { %234 = vxpose.xlu0.b32.cont [12/16] (narrow) %v58_v46, 32  ;;  %205 = vxpose.xlu1.b32.cont [15/16] (narrow) %v45_v47, 32  ;;  %v108_v46 = vld [vmem:[%s1322_s0 + $0x2e8] sm:$0xff]  ;;  %v122_v47 = vld [vmem:[%s1322_s0 + $0x358] sm:$0xff] }
  0x73   :  { %235 = vxpose.xlu0.b32.cont [13/16] (narrow) %v59_v48, 32  ;;  %206 = vxpose.xlu1.b32.end [16/16] (narrow) %v46_v49, 32  ;;  %v109_v48 = vld [vmem:[%s1322_s0 + $0x2f0] sm:$0xff]  ;;  %v123_v49 = vld [vmem:[%s1322_s0 + $0x360] sm:$0xff] }
  0x77   :  { %236 = vxpose.xlu0.b32.cont [14/16] (narrow) %v60_v50, 32  ;;  %255 = vxpose.xlu1.b32.start [1/16] (narrow) %v63_v51, 32  ;;  %v110_v50 = vld [vmem:[%s1322_s0 + $0x2f8] sm:$0xff]  ;;  %v124_v51 = vld [vmem:[%s1322_s0 + $0x368] sm:$0xff] }
  0x7b   :  { %237 = vxpose.xlu0.b32.cont [15/16] (narrow) %v61_v52, 32  ;;  %256 = vxpose.xlu1.b32.cont [2/16] (narrow) %v64_v53, 32  ;;  %v127_v52 = vld [vmem:[%s1322_s0 + $0x380] sm:$0xff]  ;;  %v125_v53 = vld [vmem:[%s1322_s0 + $0x370] sm:$0xff] }
  0x7f   :  { %238 = vxpose.xlu0.b32.end [16/16] (narrow) %v62_v54, 32  ;;  %257 = vxpose.xlu1.b32.cont [3/16] (narrow) %v65_v55, 32  ;;  %v128_v54 = vld [vmem:[%s1322_s0 + $0x388] sm:$0xff]  ;;  %v126_v55 = vld [vmem:[%s1322_s0 + $0x378] sm:$0xff] }
  0x83   :  { %287 = vxpose.xlu0.b32.start [1/16] (narrow) %v79_v56, 32  ;;  %258 = vxpose.xlu1.b32.cont [4/16] (narrow) %v66_v57, 32  ;;  %v129_v56 = vld [vmem:[%s1322_s0 + $0x390] sm:$0xff]  ;;  %v143_v57 = vld [vmem:[%s1322_s0 + $0x400] sm:$0xff] }
  0x87   :  { %288 = vxpose.xlu0.b32.cont [2/16] (narrow) %v80_v58, 32  ;;  %259 = vxpose.xlu1.b32.cont [5/16] (narrow) %v67_v59, 32  ;;  %v130_v58 = vld [vmem:[%s1322_s0 + $0x398] sm:$0xff]  ;;  %v144_v59 = vld [vmem:[%s1322_s0 + $0x408] sm:$0xff] }
  0x8b   :  { %289 = vxpose.xlu0.b32.cont [3/16] (narrow) %v81_v60, 32  ;;  %260 = vxpose.xlu1.b32.cont [6/16] (narrow) %v68_v61, 32  ;;  %v131_v60 = vld [vmem:[%s1322_s0 + $0x3a0] sm:$0xff]  ;;  %v145_v61 = vld [vmem:[%s1322_s0 + $0x410] sm:$0xff] }
  0x8f   :  { %290 = vxpose.xlu0.b32.cont [4/16] (narrow) %v82_v62, 32  ;;  %261 = vxpose.xlu1.b32.cont [7/16] (narrow) %v69_v63, 32  ;;  %v132_v62 = vld [vmem:[%s1322_s0 + $0x3a8] sm:$0xff]  ;;  %v146_v63 = vld [vmem:[%s1322_s0 + $0x418] sm:$0xff] }
  0x93   :  { %291 = vxpose.xlu0.b32.cont [5/16] (narrow) %v83_v1, 32  ;;  %262 = vxpose.xlu1.b32.cont [8/16] (narrow) %v70_v2, 32  ;;  %v133_v1 = vld [vmem:[%s1322_s0 + $0x3b0] sm:$0xff]  ;;  %v147_v2 = vld [vmem:[%s1322_s0 + $0x420] sm:$0xff] }
  0x97   :  { %292 = vxpose.xlu0.b32.cont [6/16] (narrow) %v84_v3, 32  ;;  %263 = vxpose.xlu1.b32.cont [9/16] (narrow) %v71_v4, 32  ;;  %v134_v3 = vld [vmem:[%s1322_s0 + $0x3b8] sm:$0xff]  ;;  %v1196_v4 = vpop.permute.xlu1 %453 }
  0x9b   :  { %293 = vxpose.xlu0.b32.cont [7/16] (narrow) %v85_v5, 32  ;;  %264 = vxpose.xlu1.b32.cont [10/16] (narrow) %v72_v6, 32  ;;  %v148_v5 = vld [vmem:[%s1322_s0 + $0x428] sm:$0xff]  ;;  %v1201_v6 = vpop.trf.xlu0 }
  0x9f   :  { %294 = vxpose.xlu0.b32.cont [8/16] (narrow) %v86_v7, 32  ;;  %265 = vxpose.xlu1.b32.cont [11/16] (narrow) %v73_v8, 32  ;;  %v135_v7 = vld [vmem:[%s1322_s0 + $0x3c0] sm:$0xff]  ;;  %v1206_v8 = vpop.permute.xlu1 %458 }
  0xa3   :  { %295 = vxpose.xlu0.b32.cont [9/16] (narrow) %v87_v9, 32  ;;  %266 = vxpose.xlu1.b32.cont [12/16] (narrow) %v74_v10, 32  ;;  %v149_v9 = vld [vmem:[%s1322_s0 + $0x430] sm:$0xff]  ;;  %v136_v10 = vld [vmem:[%s1322_s0 + $0x3c8] sm:$0xff] }
  0xa7   :  { %296 = vxpose.xlu0.b32.cont [10/16] (narrow) %v88_v11, 32  ;;  %267 = vxpose.xlu1.b32.cont [13/16] (narrow) %v75_v12, 32  ;;  %v176_v11 = vpop.trf.xlu0  ;;  %v150_v12 = vld [vmem:[%s1322_s0 + $0x438] sm:$0xff] }
  0xab   :  { %297 = vxpose.xlu0.b32.cont [11/16] (narrow) %v89_v13, 32  ;;  %268 = vxpose.xlu1.b32.cont [14/16] (narrow) %v76_v14, 32  ;;  %v137_v13 = vld [vmem:[%s1322_s0 + $0x3d0] sm:$0xff]  ;;  %v1220_v14 = vpop.permute.xlu1 %463 }
  0xaf   :  { %298 = vxpose.xlu0.b32.cont [12/16] (narrow) %v90_v15, 32  ;;  %269 = vxpose.xlu1.b32.cont [15/16] (narrow) %v77_v16, 32  ;;  %v151_v15 = vld [vmem:[%s1322_s0 + $0x440] sm:$0xff]  ;;  %v177_v16 = vpop.trf.xlu0 }
  0xb3   :  { %299 = vxpose.xlu0.b32.cont [13/16] (narrow) %v91_v17, 32  ;;  %270 = vxpose.xlu1.b32.end [16/16] (narrow) %v78_v18, 32  ;;  %v138_v17 = vld [vmem:[%s1322_s0 + $0x3d8] sm:$0xff]  ;;  %v1228_v18 = vpop.permute.xlu1 %468 }
  0xb7   :  { %300 = vxpose.xlu0.b32.cont [14/16] (narrow) %v92_v19, 32  ;;  %319 = vxpose.xlu1.b32.start [1/16] (narrow) %v95_v20, 32  ;;  %v152_v19 = vld [vmem:[%s1322_s0 + $0x448] sm:$0xff]  ;;  %v139_v20 = vld [vmem:[%s1322_s0 + $0x3e0] sm:$0xff] }
  0xbb   :  { %301 = vxpose.xlu0.b32.cont [15/16] (narrow) %v93_v21, 32  ;;  %320 = vxpose.xlu1.b32.cont [2/16] (narrow) %v96_v22, 32  ;;  %v178_v21 = vpop.trf.xlu0  ;;  %v207_v22 = vpop.trf.xlu1 }
  0xbf   :  { %302 = vxpose.xlu0.b32.end [16/16] (narrow) %v94_v23, 32  ;;  %321 = vxpose.xlu1.b32.cont [3/16] (narrow) %v97_v24, 32  ;;  %v153_v23 = vld [vmem:[%s1322_s0 + $0x450] sm:$0xff]  ;;  %v140_v24 = vld [vmem:[%s1322_s0 + $0x3e8] sm:$0xff] }
  0xc3   :  { %351 = vxpose.xlu0.b32.start [1/16] (narrow) %v111_v25, 32  ;;  %322 = vxpose.xlu1.b32.cont [4/16] (narrow) %v98_v26, 32  ;;  %v239_v25 = vpop.trf.xlu0  ;;  %v154_v26 = vld [vmem:[%s1322_s0 + $0x458] sm:$0xff] }
  0xc7   :  { %352 = vxpose.xlu0.b32.cont [2/16] (narrow) %v112_v27, 32  ;;  %323 = vxpose.xlu1.b32.cont [5/16] (narrow) %v99_v28, 32  ;;  %v141_v27 = vld [vmem:[%s1322_s0 + $0x3f0] sm:$0xff]  ;;  %v208_v28 = vpop.trf.xlu1 }
  0xcb   :  { %353 = vxpose.xlu0.b32.cont [3/16] (narrow) %v113_v29, 32  ;;  %324 = vxpose.xlu1.b32.cont [6/16] (narrow) %v100_v30, 32  ;;  %v155_v29 = vld [vmem:[%s1322_s0 + $0x460] sm:$0xff]  ;;  %v240_v30 = vpop.trf.xlu0 }
  0xcf   :  { %354 = vxpose.xlu0.b32.cont [4/16] (narrow) %v114_v31, 32  ;;  %325 = vxpose.xlu1.b32.cont [7/16] (narrow) %v101_v32, 32  ;;  %v142_v31 = vld [vmem:[%s1322_s0 + $0x3f8] sm:$0xff]  ;;  %v209_v32 = vpop.trf.xlu1 }
  0xd3   :  { %355 = vxpose.xlu0.b32.cont [5/16] (narrow) %v115_v33, 32  ;;  %326 = vxpose.xlu1.b32.cont [8/16] (narrow) %v102_v34, 32  ;;  %v156_v33 = vld [vmem:[%s1322_s0 + $0x468] sm:$0xff]  ;;  %v241_v34 = vpop.trf.xlu0 }
  0xd7   :  { %356 = vxpose.xlu0.b32.cont [6/16] (narrow) %v116_v35, 32  ;;  %327 = vxpose.xlu1.b32.cont [9/16] (narrow) %v103_v36, 32  ;;  %v157_v35 = vld [vmem:[%s1322_s0 + $0x470] sm:$0xff]  ;;  %v210_v36 = vpop.trf.xlu1 }
  0xdb   :  { %357 = vxpose.xlu0.b32.cont [7/16] (narrow) %v117_v37, 32  ;;  %328 = vxpose.xlu1.b32.cont [10/16] (narrow) %v104_v38, 32  ;;  %v158_v37 = vld [vmem:[%s1322_s0 + $0x478] sm:$0xff]  ;;  %v242_v38 = vpop.trf.xlu0 }
  0xdf   :  { %358 = vxpose.xlu0.b32.cont [8/16] (narrow) %v118_v39, 32  ;;  %329 = vxpose.xlu1.b32.cont [11/16] (narrow) %v105_v40, 32 }
  0xe3   :  { %359 = vxpose.xlu0.b32.cont [9/16] (narrow) %v119_v41, 32  ;;  %330 = vxpose.xlu1.b32.cont [12/16] (narrow) %v106_v42, 32 }
  0xe7   :  { %360 = vxpose.xlu0.b32.cont [10/16] (narrow) %v120_v43, 32  ;;  %331 = vxpose.xlu1.b32.cont [13/16] (narrow) %v107_v44, 32 }
  0xeb   :  { %361 = vxpose.xlu0.b32.cont [11/16] (narrow) %v121_v45, 32  ;;  %332 = vxpose.xlu1.b32.cont [14/16] (narrow) %v108_v46, 32 }
  0xef   :  { %362 = vxpose.xlu0.b32.cont [12/16] (narrow) %v122_v47, 32  ;;  %333 = vxpose.xlu1.b32.cont [15/16] (narrow) %v109_v48, 32 }
  0xf3   :  { %363 = vxpose.xlu0.b32.cont [13/16] (narrow) %v123_v49, 32  ;;  %334 = vxpose.xlu1.b32.end [16/16] (narrow) %v110_v50, 32 }
  0xf7   :  { %364 = vxpose.xlu0.b32.cont [14/16] (narrow) %v124_v51, 32  ;;  %383 = vxpose.xlu1.b32.start [1/16] (narrow) %v127_v52, 32  ;;  %v271_v39 = vpop.trf.xlu1  ;;  %v471_v51 = vmul.f32 %v1196_v4, %v1201_v6  ;;  %v480_v52 = vmul.f32 %v1206_v8, %v176_v11  ;;  %v491_v6 = vmul.f32 %v1220_v14, %v241_v34 }
  0xf8   :  { %v498_v11 = vmul.f32 %v1228_v18, %v178_v21 }
  0xfb   :  { %365 = vxpose.xlu0.b32.cont [15/16] (narrow) %v125_v53, 32  ;;  %384 = vxpose.xlu1.b32.cont [2/16] (narrow) %v128_v54, 32  ;;  %v272_v41 = vpop.trf.xlu1  ;;  %v489_v53 = vmul.f32 %v1220_v14, %v177_v16  ;;  %v481_v54 = vmul.f32 %v1206_v8, %v208_v28 }
  0xff   :  { %366 = vxpose.xlu0.b32.end [16/16] (narrow) %v126_v55, 32  ;;  %385 = vxpose.xlu1.b32.cont [3/16] (narrow) %v129_v56, 32  ;;  %v273_v43 = vpop.trf.xlu1  ;;  %v483_v56 = vmul.f32 %v1206_v8, %v272_v41 }
 0x103   :  { %415 = vxpose.xlu0.b32.start [1/16] (narrow) %v143_v57, 32  ;;  %386 = vxpose.xlu1.b32.cont [4/16] (narrow) %v130_v58, 32  ;;  %v303_v40 = vpop.trf.xlu0  ;;  %v274_v45 = vpop.trf.xlu1  ;;  %v507_v57 = vadd.f32 %v480_v52, %v471_v51  ;;  %v472_v58 = vmul.f32 %v1196_v4, %v207_v22 }
 0x107   :  { %416 = vxpose.xlu0.b32.cont [2/16] (narrow) %v144_v59, 32  ;;  %387 = vxpose.xlu1.b32.cont [5/16] (narrow) %v131_v60, 32  ;;  %v304_v42 = vpop.trf.xlu0  ;;  %v490_v59 = vmul.f32 %v1220_v14, %v209_v32  ;;  %v482_v60 = vmul.f32 %v1206_v8, %v240_v30 }
 0x10b   :  { %417 = vxpose.xlu0.b32.cont [3/16] (narrow) %v145_v61, 32  ;;  %388 = vxpose.xlu1.b32.cont [6/16] (narrow) %v132_v62, 32  ;;  %v305_v44 = vpop.trf.xlu0  ;;  %v474_v61 = vmul.f32 %v1196_v4, %v271_v39  ;;  %v492_v62 = vmul.f32 %v1220_v14, %v273_v43 }
 0x10f   :  { %418 = vxpose.xlu0.b32.cont [4/16] (narrow) %v146_v63, 32  ;;  %389 = vxpose.xlu1.b32.cont [7/16] (narrow) %v133_v1, 32  ;;  %v306_v46 = vpop.trf.xlu0  ;;  %v508_v1 = vadd.f32 %v507_v57, %v489_v53 }
 0x110   :  { %v502_v32 = vmul.f32 %v1228_v18, %v306_v46 }
 0x113   :  { %419 = vxpose.xlu0.b32.cont [5/16] (narrow) %v147_v2, 32  ;;  %390 = vxpose.xlu1.b32.cont [8/16] (narrow) %v134_v3, 32  ;;  %v516_v2 = vadd.f32 %v481_v54, %v472_v58  ;;  %v473_v3 = vmul.f32 %v1196_v4, %v239_v25  ;;  %v493_v25 = vmul.f32 %v1220_v14, %v305_v44 }
 0x117   :  { %420 = vxpose.xlu0.b32.cont [6/16] (narrow) %v148_v5, 32  ;;  %391 = vxpose.xlu1.b32.cont [9/16] (narrow) %v135_v7, 32  ;;  %v499_v5 = vmul.f32 %v1228_v18, %v210_v36  ;;  %v534_v7 = vadd.f32 %v483_v56, %v474_v61 }
 0x11b   :  { %421 = vxpose.xlu0.b32.cont [7/16] (narrow) %v149_v9, 32  ;;  %392 = vxpose.xlu1.b32.cont [10/16] (narrow) %v136_v10, 32  ;;  %v501_v9 = vmul.f32 %v1228_v18, %v274_v45 }
 0x11f   :  { %422 = vxpose.xlu0.b32.cont [8/16] (narrow) %v150_v12, 32  ;;  %393 = vxpose.xlu1.b32.cont [11/16] (narrow) %v137_v13, 32  ;;  %v517_v12 = vadd.f32 %v516_v2, %v490_v59  ;;  %v525_v13 = vadd.f32 %v482_v60, %v473_v3 }
 0x121   :  { %v526_v21 = vadd.f32 %v525_v13, %v491_v6 }
 0x123   :  { %423 = vxpose.xlu0.b32.cont [9/16] (narrow) %v151_v15, 32  ;;  %394 = vxpose.xlu1.b32.cont [12/16] (narrow) %v138_v17, 32  ;;  %v484_v15 = vmul.f32 %v1206_v8, %v304_v42  ;;  %v500_v17 = vmul.f32 %v1228_v18, %v242_v38 }
 0x127   :  { %424 = vxpose.xlu0.b32.cont [10/16] (narrow) %v152_v19, 32  ;;  %395 = vxpose.xlu1.b32.cont [13/16] (narrow) %v139_v20, 32  ;;  %v535_v19 = vadd.f32 %v534_v7, %v492_v62 }
 0x12b   :  { %425 = vxpose.xlu0.b32.cont [11/16] (narrow) %v153_v23, 32  ;;  %396 = vxpose.xlu1.b32.cont [14/16] (narrow) %v140_v24, 32  ;;  %v518_v23 = vadd.f32 %v517_v12, %v499_v5  ;;  %v475_v24 = vmul.f32 %v1196_v4, %v303_v40 }
 0x12d   :  { %v519_v42 = vrot.slane %v518_v23, 4 }
 0x12f   :  { %426 = vxpose.xlu0.b32.cont [12/16] (narrow) %v154_v26, 32  ;;  %397 = vxpose.xlu1.b32.cont [15/16] (narrow) %v141_v27, 32  ;;  %v536_v27 = vadd.f32 %v535_v19, %v501_v9 }
 0x131   :  { %v537_v40 = vrot.slane %v536_v27, 4 }
 0x133   :  { %427 = vxpose.xlu0.b32.cont [13/16] (narrow) %v155_v29, 32  ;;  %398 = vxpose.xlu1.b32.end [16/16] (narrow) %v142_v31, 32  ;;  %v543_v31 = vadd.f32 %v484_v15, %v475_v24  ;;  %v538_v46 = vadd.f32 %v537_v40, %v536_v27 }
 0x135   :  { %v544_v38 = vadd.f32 %v543_v31, %v493_v25 }
 0x137   :  { %428 = vxpose.xlu0.b32.cont [14/16] (narrow) %v156_v33, 32  ;;  %v335_v47 = vpop.trf.xlu1  ;;  %v545_v43 = vadd.f32 %v544_v38, %v502_v32 }
 0x138   :  { %v476_v20 = vmul.f32 %v1196_v4, %v335_v47 }
 0x139   :  { %v546_v51 = vrot.slane %v545_v43, 4 }
 0x13b   :  { %429 = vxpose.xlu0.b32.cont [15/16] (narrow) %v157_v35, 32  ;;  %v336_v49 = vpop.trf.xlu1  ;;  %v527_v35 = vadd.f32 %v526_v21, %v500_v17  ;;  %v547_v58 = vadd.f32 %v546_v51, %v545_v43 }
 0x13c   :  { %v485_v10 = vmul.f32 %v1206_v8, %v336_v49 }
 0x13d   :  { %v528_v45 = vrot.slane %v527_v35, 4  ;;  %v548_v3 = vrot.slane %v547_v58, 2 }
 0x13e   :  { %v552_v28 = vadd.f32 %v485_v10, %v476_v20 }
 0x13f   :  { %430 = vxpose.xlu0.b32.end [16/16] (narrow) %v158_v37, 32  ;;  %v337_v55 = vpop.trf.xlu1  ;;  %v509_v37 = vadd.f32 %v508_v1, %v498_v11  ;;  %v529_v52 = vadd.f32 %v528_v45, %v527_v35  ;;  %v549_v13 = vadd.f32 %v548_v3, %v547_v58 }
 0x140   :  { %v494_v22 = vmul.f32 %v1220_v14, %v337_v55  ;;  %v539_v55 = vrot.slane %v538_v46, 2 }
 0x141   :  { %v510_v47 = vrot.slane %v509_v37, 4  ;;  %v530_v59 = vrot.slane %v529_v52, 2  ;;  %v550_v21 = vrot.slane %v549_v13, 1 }
 0x142   :  { %v553_v36 = vadd.f32 %v552_v28, %v494_v22 }
 0x143   :  { %v367_v48 = vpop.trf.xlu0  ;;  %v338_v16 = vpop.trf.xlu1  ;;  %v511_v53 = vadd.f32 %v510_v47, %v509_v37  ;;  %v531_v5 = vadd.f32 %v530_v59, %v529_v52 }
 0x144   :  { %v503_v29 = vmul.f32 %v1228_v18, %v338_v16  ;;  %v477_v33 = vmul.f32 %v1196_v4, %v367_v48  ;;  %v520_v48 = vadd.f32 %v519_v42, %v518_v23 }
 0x145   :  { %v512_v60 = vrot.slane %v511_v53, 2  ;;  %v532_v15 = vrot.slane %v531_v5, 1 }
 0x146   :  { %v554_v41 = vadd.f32 %v553_v36, %v503_v29  ;;  %v521_v57 = vrot.slane %v520_v48, 2 }
 0x147   :  { %v368_v50 = vpop.trf.xlu0  ;;  %v513_v6 = vadd.f32 %v512_v60, %v511_v53  ;;  %v533_v27 = vadd.f32 %v532_v15, %v531_v5 }
 0x148   :  { %v486_v26 = vmul.f32 %v1206_v8, %v368_v50  ;;  %v555_v50 = vrot.slane %v554_v41, 4  ;;  %v522_v2 = vadd.f32 %v521_v57, %v520_v48 }
 0x149   :  { %v514_v17 = vrot.slane %v513_v6, 1 }
 0x14a   :  { %v561_v39 = vadd.f32 %v486_v26, %v477_v33  ;;  %v556_v56 = vadd.f32 %v555_v50, %v554_v41  ;;  %v523_v12 = vrot.slane %v522_v2, 1 }
 0x14b   :  { %v369_v63 = vpop.trf.xlu0  ;;  %v515_v31 = vadd.f32 %v514_v17, %v513_v6 }
 0x14c   :  { %v495_v34 = vmul.f32 %v1220_v14, %v369_v63  ;;  %v540_v63 = vadd.f32 %v539_v55, %v538_v46  ;;  %v557_v1 = vrot.slane %v556_v56, 2  ;;  %v524_v26 = vadd.f32 %v523_v12, %v522_v2 }
 0x14e   :  { %v562_v44 = vadd.f32 %v561_v39, %v495_v34  ;;  %v541_v10 = vrot.slane %v540_v63, 1  ;;  %v558_v11 = vadd.f32 %v557_v1, %v556_v56  ;;  %v551_v39 = vadd.f32 %v550_v21, %v549_v13 }
 0x14f   :  { %v370_v30 = vpop.trf.xlu0 }
 0x150   :  { %v542_v22 = vadd.f32 %v541_v10, %v540_v63  ;;  %v559_v23 = vrot.slane %v558_v11, 1 }
 0x152   :  { %v560_v35 = vadd.f32 %v559_v23, %v558_v11 }
 0x168   :  { %749 = vset.pattern.permute.xlu0 %v786_v0  ;;  %v504_v0 = vmul.f32 %v1228_v18, %v370_v30  ;;  %v1299_v30 = vstv %s1323_s2 }
 0x169   :  { %v593_v34 = vadd.f32 %v1299_v30, %v542_v22  ;;  %v591_v38 = vadd.f32 %v1299_v30, %v524_v26  ;;  %v590_v42 = vadd.f32 %v1299_v30, %v515_v31  ;;  %v595_v45 = vadd.f32 %v1299_v30, %v560_v35 }
 0x16a   :  { %v563_v49 = vadd.f32 %v562_v44, %v504_v0  ;;  %v592_v0 = vadd.f32 %v1299_v30, %v533_v27  ;;  %v594_v46 = vadd.f32 %v1299_v30, %v551_v39  ;;  %v669_v35 = vlaneseq }
 0x16b   :  { %v740_v44 = vmul.f32 -1.442695, %v593_v34  ;;  %v737_v53 = vmul.f32 -1.442695, %v590_v42  ;;  %v742_v57 = vmul.f32 -1.442695, %v595_v45 }
 0x16c   :  { %v564_v54 = vrot.slane %v563_v49, 4  ;;  %v739_v48 = vmul.f32 -1.442695, %v592_v0  ;;  %v741_v59 = vmul.f32 -1.442695, %v594_v46  ;;  %v670_v39 = vshrl.u32 %v669_v35, 7 }
 0x16d   :  { %750 = vpow2.f32 %v740_v44  ;;  %vm730_vm0 = vcmp.lt.s32.totalorder %v669_v35, 128 }
 0x16e   :  { %v565_v61 = vadd.f32 %v564_v54, %v563_v49  ;;  %v738_v49 = vmul.f32 -1.442695, %v591_v38 }
 0x170   :  { %v566_v7 = vrot.slane %v565_v61, 2  ;;  %752 = vpow2.f32 %v738_v49 }
 0x171   :  { %754 = vpow2.f32 %v739_v48 }
 0x172   :  { %v567_v19 = vadd.f32 %v566_v7, %v565_v61  ;;  %756 = vpow2.f32 %v737_v53 }
 0x173   :  { %758 = vpow2.f32 %v742_v57 }
 0x174   :  { %v568_v32 = vrot.slane %v567_v19, 1  ;;  %760 = vpow2.f32 %v741_v59 }
 0x176   :  { %v569_v43 = vadd.f32 %v568_v32, %v567_v19 }
 0x177   :  { %v399_v62 = vpop.trf.xlu1  ;;  %v751_v7 = vpop.eup %750 }
 0x178   :  { %v478_v24 = vmul.f32 %v1196_v4, %v399_v62  ;;  %v596_v54 = vadd.f32 %v1299_v30, %v569_v43  ;;  %v629_v15 = vadd.f32 1.0, %v751_v7 }
 0x17a   :  { %v753_v10 = vpop.eup %752 }
 0x17b   :  { %v400_v9 = vpop.trf.xlu1  ;;  %v755_v12 = vpop.eup %754  ;;  %v627_v17 = vadd.f32 1.0, %v753_v10 }
 0x17c   :  { %v487_v16 = vmul.f32 %v1206_v8, %v400_v9  ;;  %v757_v13 = vpop.eup %756 }
 0x17d   :  { %v626_v23 = vadd.f32 1.0, %v757_v13 }
 0x17e   :  { %v570_v28 = vadd.f32 %v487_v16, %v478_v24 }
 0x17f   :  { %v401_v20 = vpop.trf.xlu1 }
 0x180   :  { %v496_v25 = vmul.f32 %v1220_v14, %v401_v20  ;;  %v628_v20 = vadd.f32 1.0, %v755_v12 }
 0x182   :  { %v571_v36 = vadd.f32 %v570_v28, %v496_v25 }
 0x183   :  { %v431_v29 = vpop.trf.xlu0  ;;  %v402_v33 = vpop.trf.xlu1 }
 0x184   :  { %v505_v37 = vmul.f32 %v1228_v18, %v402_v33  ;;  %v479_v55 = vmul.f32 %v1196_v4, %v431_v29  ;;  %v787_v33 = vmov 1966171168  }
 0x185   :  { %v667_v34 = vunpack.c.l.s4 %v787_v33 }
 0x186   :  { %v572_v40 = vadd.f32 %v571_v36, %v505_v37 }
 0x187   :  { %v432_v41 = vpop.trf.xlu0  ;;  %v668_v38 = vunpack.c.0.s8 %v667_v34 }
 0x188   :  { %v573_v47 = vrot.slane %v572_v40, 4  ;;  %v488_v50 = vmul.f32 %v1206_v8, %v432_v41  ;;  %v743_v8 = vmul.f32 -1.442695, %v596_v54 }
 0x189   :  { %v671_v43 = vsub.s32 %v668_v38, %v670_v39 }
 0x18a   :  { %v574_v51 = vadd.f32 %v573_v47, %v572_v40  ;;  %v579_v60 = vadd.f32 %v488_v50, %v479_v55  ;;  %762 = vpow2.f32 %v743_v8 }
 0x18b   :  { %v433_v52 = vpop.trf.xlu0 }
 0x18c   :  { %v497_v56 = vmul.f32 %v1220_v14, %v433_v52  ;;  %v575_v58 = vrot.slane %v574_v51, 2 }
 0x18e   :  { %v576_v61 = vadd.f32 %v575_v58, %v574_v51  ;;  %v580_v63 = vadd.f32 %v579_v60, %v497_v56 }
 0x18f   :  { %v434_v62 = vpop.trf.xlu0 }
 0x190   :  { %v506_v1 = vmul.f32 %v1228_v18, %v434_v62  ;;  %v577_v2 = vrot.slane %v576_v61, 1  ;;  %v759_v18 = vpop.eup %758 }
 0x191   :  { %v761_v19 = vpop.eup %760  ;;  %v631_v25 = vadd.f32 1.0, %v759_v18 }
 0x192   :  { %v581_v4 = vadd.f32 %v580_v63, %v506_v1  ;;  %v578_v3 = vadd.f32 %v577_v2, %v576_v61  ;;  %v630_v21 = vadd.f32 1.0, %v761_v19 }
 0x194   :  { %v582_v14 = vrot.slane %v581_v4, 4  ;;  %v597_v5 = vadd.f32 %v1299_v30, %v578_v3  ;;  %v763_v24 = vpop.eup %762 }
 0x195   :  { %v632_v28 = vadd.f32 1.0, %v763_v24 }
 0x196   :  { %v583_v6 = vadd.f32 %v582_v14, %v581_v4  ;;  %v744_v9 = vmul.f32 -1.442695, %v597_v5 }
 0x198   :  { %v584_v11 = vrot.slane %v583_v6, 2  ;;  %764 = vpow2.f32 %v744_v9 }
 0x199   :  { %766 = vrcp.f32 %v629_v15 }
 0x19a   :  { %v585_v16 = vadd.f32 %v584_v11, %v583_v6  ;;  %768 = vrcp.f32 %v627_v17 }
 0x19b   :  { %770 = vrcp.f32 %v628_v20 }
 0x19c   :  { %v586_v22 = vrot.slane %v585_v16, 1  ;;  %772 = vrcp.f32 %v626_v23 }
 0x19d   :  { %774 = vrcp.f32 %v631_v25 }
 0x19e   :  { %v587_v26 = vadd.f32 %v586_v22, %v585_v16  ;;  %776 = vrcp.f32 %v630_v21 }
 0x1a0   :  { %v598_v27 = vadd.f32 %v1299_v30, %v587_v26 }
 0x1a2   :  { %v745_v29 = vmul.f32 -1.442695, %v598_v27  ;;  %v765_v31 = vpop.eup %764 }
 0x1a3   :  { %v633_v32 = vadd.f32 1.0, %v765_v31  ;;  %v767_v36 = vpop.eup %766 }
 0x1a4   :  { %778 = vpow2.f32 %v745_v29  ;;  %v769_v37 = vpop.eup %768 }
 0x1a5   :  { %780 = vrcp.f32 %v632_v28  ;;  %v771_v0 = vpop.eup %770 }
 0x1a6   :  { %782 = vrcp.f32 %v633_v32  ;;  %v773_v40 = vpop.eup %772  ;;  %v663_v30 = vcombine.low %v771_v0, %v767_v36 }
 0x1a7   :  { %v775_v41 = vpop.eup %774  ;;  %v662_v44 = vcombine.low %v773_v40, %v769_v37 }
 0x1a8   :  { %v777_v42 = vpop.eup %776  ;;  %v679_v49 = vrot.slane %v663_v30, %v671_v43 }
 0x1a9   :  { %v664_v46 = vcombine.low %v777_v42, %v775_v41  ;;  %v672_v51 = vrot.slane %v662_v44, %v671_v43 }
 0x1ab   :  { %v694_v53 = vcombine.low %v672_v51, %v679_v49  ;;  %v686_v54 = vrot.slane %v664_v46, %v671_v43 }
 0x1ad   :  { %v702_v57 = vrot.slane %v694_v53, %v671_v43 }
 0x1ae   :  { %v779_v45 = vpop.eup %778 }
 0x1af   :  { %v781_v47 = vpop.eup %780  ;;  %v634_v50 = vadd.f32 1.0, %v779_v45 }
 0x1b0   :  { %v783_v48 = vpop.eup %782 }
 0x1b1   :  { %v665_v52 = vcombine.low %v781_v47, %v783_v48  ;;  %784 = vrcp.f32 %v634_v50 }
 0x1b3   :  { %v693_v55 = vrot.slane %v665_v52, %v671_v43 }
 0x1b5   :  { %v695_v56 = vcombine.low %v686_v54, %v693_v55 }
 0x1b7   :  { %v709_v58 = vrot.slane %v695_v56, %v671_v43 }
 0x1b9   :  { %v710_v59 = vcombine.low %v702_v57, %v709_v58 }
 0x1bb   :  { %v785_v60 = vpop.eup %784  ;;  %727 = vst [vmem:[%s1324_s3] sm:$0xff] %v710_v59 }
 0x1bc   :  { %v717_v61 = vrot.slane %v785_v60, %v671_v43 }
 0x1be   :  { %v724_v62 = vrot.slane %v717_v61, %v671_v43 }
 0x1c0   :  { %732 = vst.msk [vmem:[%s1324_s3 + $0x8] sm:$0x1] %vm730_vm0, %v724_v62 }

</bundles_post_ra>
